<compile_context>
chip_gen: v7x
topology: tpu7x:2x2x1
jax: 0.10.0
libtpu: 0.0.40
codegen_flags: <defaults>
</compile_context>

<pallas_src>
import functools
import math

import jax
import jax.numpy as jnp
from jax.experimental import pallas as pl
from jax.experimental.pallas import tpu as pltpu


# ----------------------------------------------------------------------------
# Parameter construction (PyTorch __init__ equivalent, plain JAX)
# ----------------------------------------------------------------------------
def make_pe(max_len: int, d_model: int, dtype=jnp.float32):
    """Sinusoidal positional-encoding buffer, shape (max_len, 1, d_model)."""
    position = jnp.arange(max_len, dtype=jnp.float32)[:, None]                   # (L, 1)
    div_term = jnp.exp(
        jnp.arange(0, d_model, 2, dtype=jnp.float32) * (-math.log(10000.0) / d_model)
    )                                                                             # (D/2,)
    pe = jnp.zeros((max_len, d_model), dtype=jnp.float32)
    pe = pe.at[:, 0::2].set(jnp.sin(position * div_term))
    pe = pe.at[:, 1::2].set(jnp.cos(position * div_term))
    return pe[:, None, :].astype(dtype)                                           # (L, 1, D)


# ----------------------------------------------------------------------------
# Kernels (pure elementwise; work for both the 3-D and the flattened 2-D layout)
# ----------------------------------------------------------------------------
def _pe_add_kernel(x_ref, pe_ref, o_ref):
    # eval / p == 0 path: just the broadcast add, in the input dtype.
    o_ref[...] = (x_ref[...] + pe_ref[...]).astype(o_ref.dtype)


def _pe_add_dropout_kernel(x_ref, pe_ref, u_ref, o_ref, *, dropout_p: float):
    # train path: inverted dropout. keep with prob (1-p), scale kept by 1/(1-p).
    y = x_ref[...] + pe_ref[...]
    scale = jnp.asarray(1.0 / (1.0 - dropout_p), dtype=y.dtype)
    keep = u_ref[...] >= jnp.asarray(dropout_p, dtype=u_ref.dtype)
    o_ref[...] = jnp.where(keep, y * scale, jnp.zeros_like(y)).astype(o_ref.dtype)


# ----------------------------------------------------------------------------
# pallas_call wrapper: 1-D grid over the leading axis, ~1 MiB blocks per buffer
# ----------------------------------------------------------------------------
_TARGET_BLOCK_BYTES = 1 << 20  # per-buffer block budget; safe on v5e/v6e/v7x


def _call_elementwise(x, pe_b, u, dropout_p):
    """x: (L, ...), pe_b broadcast-compatible with x, u: None or x-shaped."""
    lead = x.shape[0]
    rest = math.prod(x.shape[1:])
    itemsize = x.dtype.itemsize

    tl = max(1, _TARGET_BLOCK_BYTES // max(1, rest * itemsize))
    if x.ndim == 2:
        # leading dim sits in the sublane slot: block must be a multiple of 8
        # or span the full extent.
        if tl < lead:
            tl = max(8, tl - (tl % 8))
        tl = min(tl, lead)
        if tl != lead and tl % 8 != 0:
            tl = lead
    else:
        tl = min(tl, lead)

    grid = (pl.cdiv(lead, tl),)

    def lead_map(i):
        return (i,) + (0,) * (x.ndim - 1)

    x_block = (tl,) + x.shape[1:]
    pe_block = (tl,) + pe_b.shape[1:]

    in_specs = [
        pl.BlockSpec(x_block, lead_map),
        pl.BlockSpec(pe_block, lead_map),   # pe block reused across batch (no re-broadcast)
    ]
    args = [x, pe_b]
    if u is not None:
        in_specs.append(pl.BlockSpec(x_block, lead_map))
        args.append(u)
        kernel = functools.partial(_pe_add_dropout_kernel, dropout_p=float(dropout_p))
    else:
        kernel = _pe_add_kernel

    return pl.pallas_call(
        kernel,
        out_shape=jax.ShapeDtypeStruct(x.shape, x.dtype),
        grid=grid,
        in_specs=in_specs,
        out_specs=pl.BlockSpec(x_block, lead_map),
        compiler_params=pltpu.CompilerParams(dimension_semantics=("parallel",)),
    )(*args)


def positional_encoding(x, pe, *, dropout_p: float = 0.1, train: bool = True, rng_key=None):
    """x: (S, B, D); pe: (max_len, 1, D). Returns dropout(x + pe[:S])."""
    S, B, D = x.shape
    pe_s = pe[:S].astype(x.dtype)                      # (S, 1, D), compute-dtype native
    p = float(dropout_p)

    use_dropout = train and p > 0.0
    if use_dropout and p >= 1.0:                       # p == 1 drops everything
        return jnp.zeros_like(x)

    if use_dropout:
        if rng_key is None:
            rng_key = jax.random.PRNGKey(0)
        u = jax.random.uniform(rng_key, x.shape, dtype=jnp.float32)
    else:
        u = None

    total = S * B * D
    if D % 128 != 0 and total % 128 == 0:
        # Lane-dense 2-D path for small / unaligned d_model: broadcast pe over
        # batch (tiny at these sizes) and flatten everything to (rows, 128) so
        # stores are full-lane instead of masked partial stores.
        rows = total // 128
        x2 = x.reshape(rows, 128)
        pe2 = jnp.broadcast_to(pe_s, (S, B, D)).reshape(rows, 128)
        u2 = None if u is None else u.reshape(rows, 128)
        out2 = _call_elementwise(x2, pe2, u2, p)
        return out2.reshape(S, B, D)

    # 3-D path (d_model already lane-aligned for real transformer widths).
    return _call_elementwise(x, pe_s, u, p)


# ----------------------------------------------------------------------------
# Demo / correctness check at small, module-consistent shapes
# ----------------------------------------------------------------------------
if __name__ == "__main__":
    S, B, D, MAX_LEN = 8, 2, 32, 64
    DROPOUT_P = 0.1

    key = jax.random.PRNGKey(0)
    kx, kd = jax.random.split(key)
    x = jax.random.normal(kx, (S, B, D), dtype=jnp.float32)
    pe = make_pe(MAX_LEN, D)

    # Eval mode (dropout disabled): exact check of the positional-encoding add.
    y_eval = jax.block_until_ready(
        positional_encoding(x, pe, dropout_p=DROPOUT_P, train=False)
    )
    ref = x + pe[:S]
    assert jnp.allclose(y_eval, ref, atol=1e-6), "positional-encoding add mismatch"

    # Train mode with dropout active (host-provided key -> fresh mask per call).
    y_train = jax.block_until_ready(
        positional_encoding(x, pe, dropout_p=DROPOUT_P, train=True, rng_key=kd)
    )
    assert y_train.shape == (S, B, D)
    # Surviving elements must equal (x + pe) / (1 - p); dropped ones are zero.
    scaled_ref = ref * (1.0 / (1.0 - DROPOUT_P))
    kept = y_train != 0
    assert jnp.allclose(jnp.where(kept, y_train, scaled_ref), scaled_ref, atol=1e-5)

    print("KERNEL_OK")
</pallas_src>

<mosaic_0001>
module attributes {stable_mosaic.version = 11 : i64} {
  func.func @_pe_add_kernel(%arg0: i32, %arg1: memref<4x128xf32, #tpu.memory_space<vmem>>, %arg2: memref<4x128xf32, #tpu.memory_space<vmem>>, %arg3: memref<4x128xf32, #tpu.memory_space<vmem>>) attributes {dimension_semantics = [#tpu.dimension_semantics<parallel>], iteration_bounds = array<i64: 1>, scalar_prefetch = 0 : i64, scratch_operands = 0 : i64, tpu.core_type = #tpu.core_type<tc>, window_params = [{transform_indices = @transform_0, window_bounds = array<i64: 4, 128>}, {transform_indices = @transform_1, window_bounds = array<i64: 4, 128>}, {transform_indices = @transform_2, window_bounds = array<i64: 4, 128>}]} {
    %c0 = arith.constant 0 : index
    %c0_0 = arith.constant 0 : index
    %0 = vector.load %arg1[%c0, %c0_0] : memref<4x128xf32, #tpu.memory_space<vmem>>, vector<4x128xf32>
    %c0_1 = arith.constant 0 : index
    %c0_2 = arith.constant 0 : index
    %1 = vector.load %arg2[%c0_1, %c0_2] : memref<4x128xf32, #tpu.memory_space<vmem>>, vector<4x128xf32>
    %2 = arith.addf %0, %1 : vector<4x128xf32>
    %c0_3 = arith.constant 0 : index
    %c0_4 = arith.constant 0 : index
    %3 = vector.load %arg3[%c0_3, %c0_4] : memref<4x128xf32, #tpu.memory_space<vmem>>, vector<4x128xf32>
    tpu.vector_store %arg3[%c0_3, %c0_4], %2 {strides = array<i32>} : memref<4x128xf32, #tpu.memory_space<vmem>>, vector<4x128xf32>,
    return
  }
  func.func @transform_0(%arg0: i32) -> (i32, i32) {
    %c0_i32 = arith.constant 0 : i32
    %c0_i32_0 = arith.constant 0 : i32
    return %arg0, %c0_i32 : i32, i32
  }
  func.func @transform_1(%arg0: i32) -> (i32, i32) {
    %c0_i32 = arith.constant 0 : i32
    %c0_i32_0 = arith.constant 0 : i32
    return %arg0, %c0_i32 : i32, i32
  }
  func.func @transform_2(%arg0: i32) -> (i32, i32) {
    %c0_i32 = arith.constant 0 : i32
    %c0_i32_0 = arith.constant 0 : i32
    return %arg0, %c0_i32 : i32, i32
  }
}

</mosaic_0001>

<bundles_post_ra>
// kernel: tpu_custom_call.1
= control target key start
LH: loop header
LB: loop body
LE: loop exit
PB: predicated region body
PF: predicated region fallthrough
CT: control target
= control target key end

     0   :  { %7 = vsyncpa [#allocation3], 0  ;;  %s185_s0 = inlined_call_operand.hbm [shape: f32[4,128], index: 0, kind: input, shape index: {}]   ;;  %s186_s1 = inlined_call_operand.hbm [shape: f32[4,128], index: 1, kind: input, shape index: {}]   ;;  %s187_s2 = inlined_call_operand.hbm [shape: f32[4,128], index: 2, kind: output, shape index: {}]  }
   0x1   :  { %8 = vsyncpa [#allocation6], 0 }
   0x2   :  { %9 = vsyncpa [#allocation4], 0  ;;  %s131_s9 = smov [#allocation2]   ;;  %s132_s11 = smov [#allocation5]  }
   0x3   :  { %s16_s10 = sshll.u32 %s131_s9, 4  ;;  %s26_s12 = sshll.u32 %s132_s11, 4  ;;  %s17_s10 = int_to_ptr.vmem [resolvable:$true] %s16_s10  ;;  %s27_s12 = int_to_ptr.vmem [resolvable:$true] %s26_s12 }
   0x4   :  { %s59_s15 = scalar_lea.hbm %s185_s0, 64 }
   0x5   :  { %p60_p0 = scmp.ne.s32.totalorder %s185_s0, %s59_s15  ;;  %p63_p1 = scmp.lt.u32.totalorder %s59_s15, %s185_s0 }
   0x7   :  { %p65_p2 = pnand %p63_p1, %p60_p0 }
   0x9   :  { %68 = shalt.err (!%p65_p2)
}
   0xa   :  { %s69_s20 = scalar_lea.vmem %s17_s10, 64  ;;  %p74_p4 = scmp.lt.s32.totalorder %s17_s10, %s17_s10 }
   0xb   :  { %p70_p3 = scmp.ne.s32.totalorder %s17_s10, %s69_s20  ;;  %p75_p5 = scmp.lt.s32.totalorder %s69_s20, %s69_s20 }
   0xd   :  { %p76_p6 = por %p75_p5, %p74_p4 }
   0xf   :  { %p77_p7 = pnand %p76_p6, %p70_p3 }
  0x11   :  { %80 = shalt.err (!%p77_p7)
}
  0x12   :  { %19 = dma.hbm_to_vmem [thread:$0]  %s185_s0, 64, %s17_s10, [#allocation3]  }
  0x13   :  { %s81_s25 = scalar_lea.hbm %s186_s1, 64 }
  0x14   :  { %p82_p8 = scmp.ne.s32.totalorder %s186_s1, %s81_s25  ;;  %p85_p9 = scmp.lt.u32.totalorder %s81_s25, %s186_s1 }
  0x16   :  { %p87_p10 = pnand %p85_p9, %p82_p8 }
  0x18   :  { %90 = shalt.err (!%p87_p10)
}
  0x19   :  { %s91_s30 = scalar_lea.vmem %s27_s12, 64  ;;  %p96_p12 = scmp.lt.s32.totalorder %s27_s12, %s27_s12 }
  0x1a   :  { %p92_p11 = scmp.ne.s32.totalorder %s27_s12, %s91_s30  ;;  %p97_p13 = scmp.lt.s32.totalorder %s91_s30, %s91_s30 }
  0x1c   :  { %p98_p0 = por %p97_p13, %p96_p12 }
  0x1e   :  { %p99_p1 = pnand %p98_p0, %p92_p11 }
  0x20   :  { %102 = shalt.err (!%p99_p1)
}
  0x21   :  { %29 = dma.hbm_to_vmem [thread:$0]  %s186_s1, 64, %s27_s12, [#allocation6]  }
  0x22   :  { %125 = dma.done.wait [#allocation3], 64  }
  0x23   :  { %126 = vsyncadd [#allocation3], 4294967232 }
  0x24   :  { %127 = dma.done.wait [#allocation6], 64  }
  0x25   :  { %128 = vsyncadd [#allocation6], 4294967232  ;;  %s133_s4 = smov [#allocation7]   ;;  %v36_v0 = vld [vmem:[#allocation2] sm:$0xf] }
  0x26   :  { %s46_s5 = sshll.u32 %s133_s4, 4  ;;  %v37_v1 = vld [vmem:[#allocation5] sm:$0xf]  ;;  %s47_s5 = int_to_ptr.vmem [resolvable:$true] %s46_s5 }
  0x27   :  { %v38_v2 = vadd.f32 %v37_v1, %v36_v0  ;;  %s103_s6 = scalar_lea.vmem %s47_s5, 64  ;;  %p108_p3 = scmp.lt.s32.totalorder %s47_s5, %s47_s5 }
  0x28   :  { %p104_p2 = scmp.ne.s32.totalorder %s47_s5, %s103_s6  ;;  %p109_p4 = scmp.lt.s32.totalorder %s103_s6, %s103_s6 }
  0x29   :  { %39 = vst [vmem:[#allocation7] sm:$0xf] %v38_v2 }
  0x2a   :  { %p110_p5 = por %p109_p4, %p108_p3 }
  0x2c   :  { %p111_p6 = pnand %p110_p5, %p104_p2 }
  0x2e   :  { %114 = shalt.err (!%p111_p6)
}
  0x2f   :  { %s115_s8 = scalar_lea.hbm %s187_s2, 64 }
  0x30   :  { %p116_p7 = scmp.ne.s32.totalorder %s187_s2, %s115_s8  ;;  %p119_p8 = scmp.lt.u32.totalorder %s115_s8, %s187_s2 }
  0x32   :  { %p121_p9 = pnand %p119_p8, %p116_p7 }
  0x34   :  { %124 = shalt.err (!%p121_p9)
}
  0x35   :  { %49 = dma.vmem_to_hbm [thread:$0]  %s47_s5, 64, %s187_s2, [#allocation4]  }
  0x36   :  { %129 = dma.done.wait [#allocation4], 64  }
  0x37   :  { %130 = vsyncadd [#allocation4], 4294967232 }
  0x38   :  { %53 = vsyncpa [#allocation3], 1 }
  0x39   :  { %54 = vsyncpa [#allocation6], 1 }
  0x3a   :  { %55 = vsyncpa [#allocation4], 1 }

</bundles_post_ra>
